<compile_context>
chip_gen: v7x
topology: tpu7x:2x2x1
jax: 0.10.0
libtpu: 0.0.40
codegen_flags: <defaults>
</compile_context>

<pallas_src>
import functools
import math

import jax
import jax.numpy as jnp
import numpy as np
from jax.experimental import pallas as pl
from jax.experimental.pallas import tpu as pltpu


def _xlogx(v):
    return v * math.log(v) if v > 0.0 else 0.0


def _round_up(a, b):
    return (a + b - 1) // b * b


def _label_smoothing_kernel(x_ref, tgt_ref, out_ref, *,
                            padding_idx, base, confid, neg_h):
    x = x_ref[...].astype(jnp.float32)          # (tn, V) log-probs
    tgt = tgt_ref[...]                          # (tn, 1) int32 class indices
    tn, V = x.shape

    ids = jax.lax.broadcasted_iota(jnp.int32, (tn, V), 1)

    # c[i, j] = t[i, j] * x[i, j] at non-padding columns,
    #           -H                 at the padding column of valid rows,
    #           0                  everywhere on padded (target == padding_idx) rows.
    # => total loss = -sum(c)   (since sum_j t*log(t) == H per valid row).
    w = jnp.where(ids == tgt, jnp.float32(confid), jnp.float32(base))
    c = w * x
    c = jnp.where(ids == padding_idx, jnp.float32(neg_h), c)
    c = jnp.where(tgt != padding_idx, c, jnp.float32(0.0))

    # Fold (tn, V) -> (8, W) partial sums using only VALU adds (no XLU cross-lane work).
    # Sublane fold: layout-preserving reshape, reduce over the major axis.
    p = c.reshape(tn // 8, 8, V).sum(axis=0)          # (8, V)
    # Lane-group fold: static 128-aligned slices (pure vreg adds).
    if V % 128 == 0 and V > 128:
        q = p[:, 0:128]
        for l in range(128, V, 128):
            q = q + p[:, l:l + 128]
    else:
        q = p                                          # W == V (or V == 128)

    out_ref[...] = q


def label_smoothing_loss(x, target, *, size, padding_idx, smoothing=0.0,
                         tn=None, vmem_limit_bytes=48 * 1024 * 1024):
    """Pallas equivalent of LabelSmoothing.forward(x, target) -> scalar f32.

    x:      (N, V) log-probabilities (f32 or bf16)
    target: (N,)   integer class indices
    """
    N, V = x.shape
    assert V == size

    itemsize = jnp.dtype(x.dtype).itemsize
    sub = 16 if itemsize < 4 else 8            # sublane tile: 8 for f32, 16 for bf16

    if tn is None:
        # Keep each x block ~<=12 MiB so the double-buffered pair stays ~24 MiB
        # (fits comfortably under the 48 MiB scoped limit on v5e/v6e and v7x's 64 MiB VMEM),
        # and cap the row count to keep the in-kernel fold small.
        per_buf_bytes = 12 * 1024 * 1024
        tn = (per_buf_bytes // (V * itemsize)) // sub * sub
        tn = min(tn, 4096)
    tn = int(min(max(tn, sub), _round_up(N, sub)))
    tn = _round_up(tn, sub)

    num_tiles = -(-N // tn)
    Np = num_tiles * tn

    tgt = target.astype(jnp.int32).reshape(N, 1)
    if Np != N:
        # Padded rows get target == padding_idx -> they contribute exactly 0.
        x = jnp.pad(x, ((0, Np - N), (0, 0)))
        tgt = jnp.pad(tgt, ((0, Np - N), (0, 0)), constant_values=padding_idx)

    W = 128 if V % 128 == 0 else V
    base = smoothing / (size - 2)
    confid = 1.0 - smoothing
    h = (size - 2) * _xlogx(base) + _xlogx(confid)

    kernel = functools.partial(
        _label_smoothing_kernel,
        padding_idx=int(padding_idx),
        base=float(base),
        confid=float(confid),
        neg_h=float(-h),
    )

    partials = pl.pallas_call(
        kernel,
        out_shape=jax.ShapeDtypeStruct((num_tiles, 8, W), jnp.float32),
        grid_spec=pltpu.PrefetchScalarGridSpec(
            num_scalar_prefetch=0,
            grid=(num_tiles,),
            in_specs=[
                pl.BlockSpec((tn, V), lambda i: (i, 0)),
                pl.BlockSpec((tn, 1), lambda i: (i, 0)),
            ],
            out_specs=pl.BlockSpec((None, 8, W), lambda i: (i, 0, 0)),
        ),
        compiler_params=pltpu.CompilerParams(
            dimension_semantics=("parallel",),       # independent tiles -> megacore on v7x
            vmem_limit_bytes=int(vmem_limit_bytes),
        ),
    )(x, tgt)

    # Tiny final tree-sum outside the kernel (also numerically robust for huge N).
    return -jnp.sum(partials)


def _reference_loss(x, target, *, size, padding_idx, smoothing):
    # Pure-JAX reference replicating the PyTorch module semantics exactly.
    N, V = x.shape
    base = smoothing / (size - 2)
    t = jnp.full((N, V), base, dtype=jnp.float32)
    t = t.at[:, padding_idx].set(0.0)
    t = t.at[jnp.arange(N), target].set(1.0 - smoothing)
    t = jnp.where((target == padding_idx)[:, None], 0.0, t)
    safe_t = jnp.where(t > 0, t, 1.0)
    return jnp.sum(jnp.where(t > 0, t * jnp.log(safe_t), 0.0) - t * x.astype(jnp.float32))


if __name__ == "__main__":
    key = jax.random.PRNGKey(0)
    N, V = 64, 128                 # e.g. batch=8 x seq=8 token rows, vocab=128 (lane-dense)
    padding_idx = 0
    smoothing = 0.1

    k_logits, k_tgt = jax.random.split(key)
    logits = jax.random.normal(k_logits, (N, V), dtype=jnp.float32)
    x = jax.nn.log_softmax(logits, axis=-1)            # KLDivLoss expects log-probs
    target = jax.random.randint(k_tgt, (N,), 0, V, dtype=jnp.int32)
    # force some padded rows to exercise the index_fill path
    target = target.at[3].set(padding_idx).at[10].set(padding_idx).at[41].set(padding_idx)

    # Case 1: single large tile (auto tn).
    loss = label_smoothing_loss(x, target, size=V, padding_idx=padding_idx,
                                smoothing=smoothing)
    loss = jax.block_until_ready(loss)
    ref = _reference_loss(x, target, size=V, padding_idx=padding_idx, smoothing=smoothing)
    np.testing.assert_allclose(np.asarray(loss), np.asarray(ref), rtol=1e-4, atol=1e-3)

    # Case 2: multi-tile grid with a ragged row count (exercises padding + parallel grid).
    x2, t2 = x[:60], target[:60]
    loss2 = label_smoothing_loss(x2, t2, size=V, padding_idx=padding_idx,
                                 smoothing=smoothing, tn=16)
    loss2 = jax.block_until_ready(loss2)
    ref2 = _reference_loss(x2, t2, size=V, padding_idx=padding_idx, smoothing=smoothing)
    np.testing.assert_allclose(np.asarray(loss2), np.asarray(ref2), rtol=1e-4, atol=1e-3)

    print("KERNEL_OK")
</pallas_src>

<mosaic_0001>
module attributes {stable_mosaic.version = 11 : i64} {
  func.func @_label_smoothing_kernel(%arg0: i32, %arg1: memref<64x128xf32, #tpu.memory_space<vmem>>, %arg2: memref<64x1xi32, #tpu.memory_space<vmem>>, %arg3: memref<1x8x128xf32, #tpu.memory_space<vmem>>) attributes {dimension_semantics = [#tpu.dimension_semantics<parallel>], iteration_bounds = array<i64: 1>, scalar_prefetch = 0 : i64, scratch_operands = 0 : i64, tpu.core_type = #tpu.core_type<tc>, window_params = [{transform_indices = @transform_0, window_bounds = array<i64: 64, 128>}, {transform_indices = @transform_1, window_bounds = array<i64: 64, 1>}, {transform_indices = @transform_2, window_bounds = array<i64: 1, 8, 128>}]} {
    %c0 = arith.constant 0 : index
    %c0_0 = arith.constant 0 : index
    %0 = vector.load %arg1[%c0, %c0_0] : memref<64x128xf32, #tpu.memory_space<vmem>>, vector<64x128xf32>
    %c0_1 = arith.constant 0 : index
    %c0_2 = arith.constant 0 : index
    %1 = vector.load %arg2[%c0_1, %c0_2] : memref<64x1xi32, #tpu.memory_space<vmem>>, vector<64x1xi32>
    %2 = tpu.iota {dimensions = array<i32: 1>} : vector<64x128xi32>
    %3 = vector.broadcast %1 : vector<64x1xi32> to vector<64x128xi32>
    %4 = arith.cmpi eq, %2, %3 : vector<64x128xi32>
    %cst = arith.constant 0.899999976 : f32
    %cst_3 = arith.constant 7.93650805E-4 : f32
    %5 = vector.broadcast %cst : f32 to vector<64x128xf32>
    %6 = vector.broadcast %cst_3 : f32 to vector<64x128xf32>
    %7 = arith.select %4, %5, %6 : vector<64x128xi1>, vector<64x128xf32>
    %8 = arith.mulf %7, %0 : vector<64x128xf32>
    %c0_i32 = arith.constant 0 : i32
    %9 = vector.broadcast %c0_i32 : i32 to vector<64x128xi32>
    %10 = arith.cmpi eq, %2, %9 : vector<64x128xi32>
    %cst_4 = arith.constant 0.808711171 : f32
    %11 = vector.broadcast %cst_4 : f32 to vector<64x128xf32>
    %12 = arith.select %10, %11, %8 : vector<64x128xi1>, vector<64x128xf32>
    %c0_i32_5 = arith.constant 0 : i32
    %13 = vector.broadcast %c0_i32_5 : i32 to vector<64x1xi32>
    %14 = arith.cmpi ne, %1, %13 : vector<64x1xi32>
    %cst_6 = arith.constant 0.000000e+00 : f32
    %15 = vector.shape_cast %14 : vector<64x1xi1> to vector<64x1xi1>
    %16 = vector.broadcast %15 : vector<64x1xi1> to vector<64x128xi1>
    %17 = vector.broadcast %cst_6 : f32 to vector<64x128xf32>
    %18 = arith.select %16, %12, %17 : vector<64x128xi1>, vector<64x128xf32>
    %19 = vector.shape_cast %18 : vector<64x128xf32> to vector<8x8x128xf32>
    %cst_7 = arith.constant dense<0.000000e+00> : vector<8x128xf32>
    %20 = vector.multi_reduction <add>, %19, %cst_7 [0] : vector<8x8x128xf32> to vector<8x128xf32>
    %c0_8 = arith.constant 0 : index
    %c0_9 = arith.constant 0 : index
    %c0_10 = arith.constant 0 : index
    %21 = vector.load %arg3[%c0_8, %c0_9, %c0_10] : memref<1x8x128xf32, #tpu.memory_space<vmem>>, vector<1x8x128xf32>
    %22 = vector.shape_cast %21 : vector<1x8x128xf32> to vector<8x128xf32>
    %23 = vector.shape_cast %20 : vector<8x128xf32> to vector<1x8x128xf32>
    tpu.vector_store %arg3[%c0_8, %c0_9, %c0_10], %23 {strides = array<i32>} : memref<1x8x128xf32, #tpu.memory_space<vmem>>, vector<1x8x128xf32>,
    return
  }
  func.func @transform_0(%arg0: i32) -> (i32, i32) {
    %c0_i32 = arith.constant 0 : i32
    %c0_i32_0 = arith.constant 0 : i32
    return %arg0, %c0_i32 : i32, i32
  }
  func.func @transform_1(%arg0: i32) -> (i32, i32) {
    %c0_i32 = arith.constant 0 : i32
    %c0_i32_0 = arith.constant 0 : i32
    return %arg0, %c0_i32 : i32, i32
  }
  func.func @transform_2(%arg0: i32) -> (i32, i32, i32) {
    %c0_i32 = arith.constant 0 : i32
    %c0_i32_0 = arith.constant 0 : i32
    %c0_i32_1 = arith.constant 0 : i32
    return %arg0, %c0_i32, %c0_i32_0 : i32, i32, i32
  }
}

</mosaic_0001>

<bundles_post_ra>
// kernel: tpu_custom_call.1
= control target key start
LH: loop header
LB: loop body
LE: loop exit
PB: predicated region body
PF: predicated region fallthrough
CT: control target
= control target key end

     0   :  { %v194_v2 = vmov 0   ;;  %s299_s0 = inlined_call_operand.vmem [shape: f32[64,128], index: 0, kind: input, shape index: {}]   ;;  %s300_s1 = inlined_call_operand.vmem [shape: s32[64,1], index: 1, kind: input, shape index: {}]   ;;  %s301_s2 = inlined_call_operand.hbm [shape: f32[1,8,128], index: 2, kind: output, shape index: {}]  }
   0x1   :  { %v22_v0 = vld [vmem:[%s300_s1 + $0x10] sm:$0xff]  ;;  %v20_v1 = vld [vmem:[%s300_s1] sm:$0xff]  ;;  %169 = vset.pattern.permute.xlu1 %v194_v2  ;;  %168 = vset.pattern.permute.xlu0 %v194_v2  ;;  %v23_v3 = vld [vmem:[%s300_s1 + $0x18] sm:$0xff] }
   0x2   :  { %37 = vperm.xlu1 %169, %v22_v0   ;;  %31 = vperm.xlu0 %168, %v20_v1   ;;  %v21_v4 = vld [vmem:[%s300_s1 + $0x8] sm:$0xff]  ;;  %vm87_vm0 = vcmp.ne.s32.totalorder %v20_v1, 0 }
   0x3   :  { %vm88_vm1 = vcmp.ne.s32.totalorder %v21_v4, 0 }
   0x4   :  { %7 = vsyncpa [#allocation3], 0  ;;  %v96_v5 = vsel %vm88_vm1, 1, %v194_v2  ;;  %v95_v6 = vsel %vm87_vm0, 1, %v194_v2  ;;  %vm89_vm2 = vcmp.ne.s32.totalorder %v22_v0, 0  ;;  %v24_v8 = vld [vmem:[%s300_s1 + $0x20] sm:$0xff]  ;;  %v28_v17 = vlaneseq }
   0x5   :  { %v97_v7 = vsel %vm89_vm2, 1, %v194_v2  ;;  %vm90_vm3 = vcmp.ne.s32.totalorder %v23_v3, 0  ;;  %v25_v10 = vld [vmem:[%s300_s1 + $0x28] sm:$0xff]  ;;  %vm91_vm4 = vcmp.ne.s32.totalorder %v24_v8, 0  ;;  %v26_v12 = vld [vmem:[%s300_s1 + $0x30] sm:$0xff]  ;;  %v27_v14 = vld [vmem:[%s300_s1 + $0x38] sm:$0xff] }
   0x6   :  { %40 = vperm.xlu1 %169, %v23_v3   ;;  %34 = vperm.xlu0 %168, %v21_v4   ;;  %v98_v9 = vsel %vm90_vm3, 1, %v194_v2  ;;  %v99_v11 = vsel %vm91_vm4, 1, %v194_v2  ;;  %vm92_vm5 = vcmp.ne.s32.totalorder %v25_v10, 0  ;;  %vm94_vm6 = vcmp.ne.s32.totalorder %v27_v14, 0  ;;  %v13_v23 = vld [vmem:[%s299_s0 + $0x8] sm:$0xff]  ;;  %v12_v28 = vld [vmem:[%s299_s0] sm:$0xff] }
   0x7   :  { %v100_v13 = vsel %vm92_vm5, 1, %v194_v2  ;;  %vm93_vm7 = vcmp.ne.s32.totalorder %v26_v12, 0  ;;  %v102_v15 = vsel %vm94_vm6, 1, %v194_v2  ;;  %v236_v20 = vand.u32 127, %v28_v17  ;;  %v14_v31 = vld [vmem:[%s299_s0 + $0x10] sm:$0xff]  ;;  %v15_v36 = vld [vmem:[%s299_s0 + $0x18] sm:$0xff] }
   0x8   :  { %v101_v16 = vsel %vm93_vm7, 1, %v194_v2  ;;  %v195_v24 = vmov 0.0007936508   ;;  %v16_v41 = vld [vmem:[%s299_s0 + $0x20] sm:$0xff]  ;;  %v17_v48 = vld [vmem:[%s299_s0 + $0x28] sm:$0xff]  ;;  %v18_v58 = vld [vmem:[%s299_s0 + $0x30] sm:$0xff] }
   0x9   :  { %vm78_vm13 = vcmp.eq.s32.totalorder %v236_v20, 0  ;;  %v19_v3 = vld [vmem:[%s299_s0 + $0x38] sm:$0xff]  ;;  %s196_s0 = smov [#allocation2]  }
   0xa   :  { %107 = vperm.xlu1 %169, %v96_v5   ;;  %104 = vperm.xlu0 %168, %v95_v6   ;;  %s157_s12 = sshll.u32 %s196_s0, 4  ;;  %s158_s12 = int_to_ptr.vmem [resolvable:$true] %s157_s12 }
   0xb   :  { %s170_s13 = scalar_lea.vmem %s158_s12, 128  ;;  %p175_p1 = scmp.lt.s32.totalorder %s158_s12, %s158_s12 }
   0xc   :  { %p171_p0 = scmp.ne.s32.totalorder %s158_s12, %s170_s13  ;;  %p176_p2 = scmp.lt.s32.totalorder %s170_s13, %s170_s13 }
   0xe   :  { %110 = vperm.xlu1 %169, %v97_v7   ;;  %43 = vperm.xlu0 %168, %v24_v8   ;;  %p177_p3 = por %p176_p2, %p175_p1 }
  0x10   :  { %p178_p4 = pnand %p177_p3, %p171_p0 }
  0x12   :  { %113 = vperm.xlu1 %169, %v98_v9   ;;  %46 = vperm.xlu0 %168, %v25_v10  }
  0x16   :  { %116 = vperm.xlu1 %169, %v99_v11   ;;  %49 = vperm.xlu0 %168, %v26_v12  }
  0x1a   :  { %119 = vperm.xlu1 %169, %v100_v13   ;;  %52 = vperm.xlu0 %168, %v27_v14  }
  0x1e   :  { %125 = vperm.xlu1 %169, %v102_v15   ;;  %122 = vperm.xlu0 %168, %v101_v16  }
  0x81   :  { %v38_v18 = vpop.permute.xlu1 %37  ;;  %v32_v19 = vpop.permute.xlu0 %31 }
  0x82   :  { %vm54_vm9 = vcmp.eq.s32.totalorder %v236_v20, %v32_v19  ;;  %vm56_vm10 = vcmp.eq.s32.totalorder %v236_v20, %v38_v18 }
  0x83   :  { %v62_v29 = vsel %vm54_vm9, 0.9, %v195_v24  ;;  %v64_v32 = vsel %vm56_vm10, 0.9, %v195_v24 }
  0x84   :  { %v70_v35 = vmul.f32 %v62_v29, %v12_v28  ;;  %v72_v38 = vmul.f32 %v64_v32, %v14_v31 }
  0x85   :  { %v41_v21 = vpop.permute.xlu1 %40  ;;  %v35_v22 = vpop.permute.xlu0 %34 }
  0x86   :  { %vm55_vm8 = vcmp.eq.s32.totalorder %v236_v20, %v35_v22  ;;  %vm57_vm11 = vcmp.eq.s32.totalorder %v236_v20, %v41_v21  ;;  %v79_v45 = vsel %vm78_vm13, 0.8087112, %v70_v35  ;;  %v81_v50 = vsel %vm78_vm13, 0.8087112, %v72_v38 }
  0x87   :  { %v63_v25 = vsel %vm55_vm8, 0.9, %v195_v24  ;;  %v65_v37 = vsel %vm57_vm11, 0.9, %v195_v24 }
  0x88   :  { %v71_v30 = vmul.f32 %v63_v25, %v13_v23  ;;  %v73_v40 = vmul.f32 %v65_v37, %v15_v36 }
  0x89   :  { %v108_v26 = vpop.permute.xlu1 %107  ;;  %v105_v27 = vpop.permute.xlu0 %104 }
  0x8a   :  { %v80_v39 = vsel %vm78_vm13, 0.8087112, %v71_v30  ;;  %vm128_vm14 = vcmp.eq.s32.totalorder %v108_v26, 1  ;;  %vm127_vm15 = vcmp.eq.s32.totalorder %v105_v27, 1  ;;  %v82_v53 = vsel %vm78_vm13, 0.8087112, %v73_v40 }
  0x8b   :  { %v136_v46 = vsel %vm128_vm14, %v80_v39, 0.0  ;;  %v135_v47 = vsel %vm127_vm15, %v79_v45, 0.0 }
  0x8c   :  { %v143_v56 = vadd.f32 %v136_v46, %v135_v47 }
  0x8d   :  { %v111_v33 = vpop.permute.xlu1 %110  ;;  %v44_v34 = vpop.permute.xlu0 %43 }
  0x8e   :  { %vm58_vm12 = vcmp.eq.s32.totalorder %v236_v20, %v44_v34  ;;  %vm129_vm0 = vcmp.eq.s32.totalorder %v111_v33, 1 }
  0x8f   :  { %v66_v42 = vsel %vm58_vm12, 0.9, %v195_v24  ;;  %v137_v52 = vsel %vm129_vm0, %v81_v50, 0.0 }
  0x90   :  { %v74_v51 = vmul.f32 %v66_v42, %v16_v41  ;;  %v144_v61 = vadd.f32 %v143_v56, %v137_v52 }
  0x91   :  { %v114_v43 = vpop.permute.xlu1 %113  ;;  %v47_v44 = vpop.permute.xlu0 %46 }
  0x92   :  { %vm59_vm1 = vcmp.eq.s32.totalorder %v236_v20, %v47_v44  ;;  %vm130_vm2 = vcmp.eq.s32.totalorder %v114_v43, 1  ;;  %v83_v62 = vsel %vm78_vm13, 0.8087112, %v74_v51 }
  0x93   :  { %v67_v49 = vsel %vm59_vm1, 0.9, %v195_v24  ;;  %v138_v59 = vsel %vm130_vm2, %v82_v53, 0.0 }
  0x94   :  { %v75_v57 = vmul.f32 %v67_v49, %v17_v48  ;;  %v145_v4 = vadd.f32 %v144_v61, %v138_v59 }
  0x95   :  { %v117_v54 = vpop.permute.xlu1 %116  ;;  %v50_v55 = vpop.permute.xlu0 %49 }
  0x96   :  { %vm131_vm3 = vcmp.eq.s32.totalorder %v117_v54, 1  ;;  %vm60_vm4 = vcmp.eq.s32.totalorder %v236_v20, %v50_v55  ;;  %v84_v5 = vsel %vm78_vm13, 0.8087112, %v75_v57 }
  0x97   :  { %v68_v60 = vsel %vm60_vm4, 0.9, %v195_v24  ;;  %v139_v63 = vsel %vm131_vm3, %v83_v62, 0.0 }
  0x98   :  { %v76_v0 = vmul.f32 %v68_v60, %v18_v58  ;;  %v146_v8 = vadd.f32 %v145_v4, %v139_v63 }
  0x99   :  { %v120_v1 = vpop.permute.xlu1 %119  ;;  %v53_v2 = vpop.permute.xlu0 %52 }
  0x9a   :  { %vm132_vm5 = vcmp.eq.s32.totalorder %v120_v1, 1  ;;  %vm61_vm6 = vcmp.eq.s32.totalorder %v236_v20, %v53_v2  ;;  %v85_v12 = vsel %vm78_vm13, 0.8087112, %v76_v0 }
  0x9b   :  { %v140_v6 = vsel %vm132_vm5, %v84_v5, 0.0  ;;  %v69_v7 = vsel %vm61_vm6, 0.9, %v195_v24 }
  0x9c   :  { %v77_v9 = vmul.f32 %v69_v7, %v19_v3  ;;  %v147_v13 = vadd.f32 %v146_v8, %v140_v6 }
  0x9d   :  { %v126_v10 = vpop.permute.xlu1 %125  ;;  %v123_v11 = vpop.permute.xlu0 %122 }
  0x9e   :  { %v86_v14 = vsel %vm78_vm13, 0.8087112, %v77_v9  ;;  %vm134_vm7 = vcmp.eq.s32.totalorder %v126_v10, 1  ;;  %vm133_vm8 = vcmp.eq.s32.totalorder %v123_v11, 1 }
  0x9f   :  { %v141_v15 = vsel %vm133_vm8, %v85_v12, 0.0  ;;  %v142_v17 = vsel %vm134_vm7, %v86_v14, 0.0 }
  0xa0   :  { %v148_v16 = vadd.f32 %v147_v13, %v141_v15 }
  0xa2   :  { %v149_v18 = vadd.f32 %v148_v16, %v142_v17 }
  0xa4   :  { %150 = vst [vmem:[#allocation2] sm:$0xff] %v149_v18 }
  0xa5   :  { %181 = shalt.err (!%p178_p4)
}
  0xa6   :  { %s182_s16 = scalar_lea.hbm %s301_s2, 128 }
  0xa7   :  { %p183_p5 = scmp.ne.s32.totalorder %s301_s2, %s182_s16  ;;  %p186_p6 = scmp.lt.u32.totalorder %s182_s16, %s301_s2 }
  0xa9   :  { %p188_p7 = pnand %p186_p6, %p183_p5 }
  0xab   :  { %191 = shalt.err (!%p188_p7)
}
  0xac   :  { %160 = dma.vmem_to_hbm [thread:$0]  %s158_s12, 128, %s301_s2, [#allocation3]  }
  0xad   :  { %192 = dma.done.wait [#allocation3], 128  }
  0xae   :  { %193 = vsyncadd [#allocation3], 4294967168 }
  0xaf   :  { %164 = vsyncpa [#allocation3], 1 }

</bundles_post_ra>
